<compile_context>
chip_gen: v7x
topology: tpu7x:2x2x1
jax: 0.10.0
libtpu: 0.0.40
codegen_flags: <defaults>
</compile_context>

<pallas_src>
import jax
import jax.numpy as jnp
from jax import lax
from jax.experimental import pallas as pl
from jax.experimental.pallas import tpu as pltpu

FEATURE_DIM = 64


# ----------------------------------------------------------------------------
# Kernel: whole sequence in one invocation; recurrence via lax.fori_loop.
# ----------------------------------------------------------------------------
def gru_seq_kernel(x_ref, h0_ref, wi_ref, wh_ref, bi_ref, bh_ref,
                   out_ref, gi_ref):
    """
    x_ref:   (T, F)    f32   inputs for all timesteps
    h0_ref:  (1, H)    f32   initial hidden
    wi_ref:  (F, 3H)   bf16  input-side weights, columns [r | z | n]
    wh_ref:  (H, 3H)   bf16  hidden-side weights, columns [r | z | n]
    bi_ref:  (1, 3H)   f32   input-side bias
    bh_ref:  (1, 3H)   f32   hidden-side bias
    out_ref: (T, H)    f32   per-step hidden states
    gi_ref:  (T, 3H)   f32   scratch: precomputed input-side projections
    """
    T = x_ref.shape[0]
    H = h0_ref.shape[-1]

    # ---- Phase 1 (non-recurrent): batched input-side projection, one MXU op.
    gi_ref[...] = (
        jnp.dot(x_ref[...].astype(jnp.bfloat16), wi_ref[...],
                preferred_element_type=jnp.float32)
        + bi_ref[...]
    )

    wh = wh_ref[...]            # (H, 3H) bf16, loaded once, resident in vregs
    bh = bh_ref[...]            # (1, 3H) f32

    # ---- Phase 2: sequential recurrence; h carried as a value (vregs).
    def step(t, h):
        gh = jnp.dot(h.astype(jnp.bfloat16), wh,
                     preferred_element_type=jnp.float32) + bh      # (1, 3H)
        gi = gi_ref[pl.ds(t, 1), :]                                # (1, 3H)

        r = jax.nn.sigmoid(gi[:, 0:H] + gh[:, 0:H])
        z = jax.nn.sigmoid(gi[:, H:2 * H] + gh[:, H:2 * H])
        n = jnp.tanh(gi[:, 2 * H:3 * H] + r * gh[:, 2 * H:3 * H])  # r on h-side only
        h_new = (1.0 - z) * n + z * h

        out_ref[pl.ds(t, 1), :] = h_new
        return h_new

    _ = lax.fori_loop(0, T, step, h0_ref[...].astype(jnp.float32), unroll=True)


# ----------------------------------------------------------------------------
# One-time parameter preparation (hoisted out of the per-step path).
# ----------------------------------------------------------------------------
def prepare_gru_params(params, hidden_size):
    """Pack PyTorch-layout GRU params: transposed, gate-dense, bf16 weights."""
    H = hidden_size
    w_i = params["weight_ih_l0"].astype(jnp.float32).T.astype(jnp.bfloat16)  # (F, 3H)
    w_h = params["weight_hh_l0"].astype(jnp.float32).T.astype(jnp.bfloat16)  # (H, 3H)
    b_i = params["bias_ih_l0"].reshape(1, 3 * H).astype(jnp.float32)
    b_h = params["bias_hh_l0"].reshape(1, 3 * H).astype(jnp.float32)
    return {"w_i": w_i, "w_h": w_h, "b_i": b_i, "b_h": b_h, "H": H}


# ----------------------------------------------------------------------------
# Sequence runner: ONE pallas_call for all T GRU steps.
# ----------------------------------------------------------------------------
def encoder_rnn_sequence(xs, h0, prep):
    """xs: (T, Feature_DIM); h0: any shape with H elements.
    Returns (all hidden states (T, H), final hidden (1, 1, H))."""
    H = prep["H"]
    xs = xs.reshape(-1, FEATURE_DIM).astype(jnp.float32)
    T = xs.shape[0]
    h0 = h0.reshape(1, H).astype(jnp.float32)

    vmem = pl.BlockSpec(memory_space=pltpu.MemorySpace.VMEM)
    out = pl.pallas_call(
        gru_seq_kernel,
        out_shape=jax.ShapeDtypeStruct((T, H), jnp.float32),
        in_specs=[vmem] * 6,
        out_specs=vmem,
        scratch_shapes=[pltpu.VMEM((T, 3 * H), jnp.float32)],
    )(xs, h0, prep["w_i"], prep["w_h"], prep["b_i"], prep["b_h"])

    return out, out[-1:].reshape(1, 1, H)


# ----------------------------------------------------------------------------
# Module-equivalent forward: EncoderRNN.forward(input_, hidden) -> (output, hidden)
# ----------------------------------------------------------------------------
def encoder_rnn_forward(input_, hidden, prep):
    x = input_.reshape(1, FEATURE_DIM)          # mirrors input_.view(1, 1, -1)
    _, h_last = encoder_rnn_sequence(x, hidden, prep)
    return h_last, h_last                       # output == hidden for seq_len=1


# ----------------------------------------------------------------------------
# Init + pure-JAX reference
# ----------------------------------------------------------------------------
def init_gru_params(key, input_size, hidden_size):
    k = 1.0 / jnp.sqrt(hidden_size)
    k1, k2, k3, k4 = jax.random.split(key, 4)
    return {
        "weight_ih_l0": jax.random.uniform(k1, (3 * hidden_size, input_size),
                                           jnp.float32, -k, k),
        "weight_hh_l0": jax.random.uniform(k2, (3 * hidden_size, hidden_size),
                                           jnp.float32, -k, k),
        "bias_ih_l0": jax.random.uniform(k3, (3 * hidden_size,), jnp.float32, -k, k),
        "bias_hh_l0": jax.random.uniform(k4, (3 * hidden_size,), jnp.float32, -k, k),
    }


def gru_reference_sequence(xs, h0, params, *, bf16_matmul=False):
    """Pure-JAX PyTorch-GRU reference; optionally rounds matmul operands to bf16."""
    H = params["weight_hh_l0"].shape[-1]

    def mm(a, w):   # a @ w.T with optional bf16 rounding of operands
        if bf16_matmul:
            a = a.astype(jnp.bfloat16).astype(jnp.float32)
            w = w.astype(jnp.bfloat16).astype(jnp.float32)
        return a @ w.T

    h = h0.reshape(1, H).astype(jnp.float32)
    outs = []
    for t in range(xs.shape[0]):
        x2 = xs[t].reshape(1, -1).astype(jnp.float32)
        gi = mm(x2, params["weight_ih_l0"]) + params["bias_ih_l0"]
        gh = mm(h, params["weight_hh_l0"]) + params["bias_hh_l0"]
        i_r, i_z, i_n = gi[:, :H], gi[:, H:2 * H], gi[:, 2 * H:]
        h_r, h_z, h_n = gh[:, :H], gh[:, H:2 * H], gh[:, 2 * H:]
        r = jax.nn.sigmoid(i_r + h_r)
        z = jax.nn.sigmoid(i_z + h_z)
        n = jnp.tanh(i_n + r * h_n)
        h = (1.0 - z) * n + z * h
        outs.append(h)
    return jnp.concatenate(outs, axis=0), h


if __name__ == "__main__":
    hidden_size = 32
    key = jax.random.PRNGKey(0)
    k_param, k_in1, k_in2 = jax.random.split(key, 3)

    params = init_gru_params(k_param, FEATURE_DIM, hidden_size)
    prep = prepare_gru_params(params, hidden_size)   # one-time weight packing

    # --- Module semantics: single step, batch=1, seq_len=1 -------------------
    input_ = jax.random.normal(k_in1, (1, 1, FEATURE_DIM), jnp.float32)
    hidden0 = jnp.zeros((1, 1, hidden_size), jnp.float32)   # EncoderRNN.initHidden()

    output, hidden = encoder_rnn_forward(input_, hidden0, prep)
    output = jax.block_until_ready(output)
    hidden = jax.block_until_ready(hidden)

    assert output.shape == (1, 1, hidden_size)
    assert hidden.shape == (1, 1, hidden_size)
    assert jnp.array_equal(output, hidden)

    ref_bf16, ref_h_bf16 = gru_reference_sequence(
        input_.reshape(1, FEATURE_DIM), hidden0, params, bf16_matmul=True)
    ref_f32, ref_h_f32 = gru_reference_sequence(
        input_.reshape(1, FEATURE_DIM), hidden0, params, bf16_matmul=False)
    if not jnp.allclose(output.reshape(1, hidden_size), ref_h_bf16,
                        atol=1e-3, rtol=1e-3):
        raise AssertionError("T=1: Pallas GRU mismatch vs bf16-weight reference")
    if not jnp.allclose(output.reshape(1, hidden_size), ref_h_f32,
                        atol=5e-2, rtol=5e-2):
        raise AssertionError("T=1: Pallas GRU drifted too far from f32 reference")

    # --- Multi-step path (whole sequence in ONE kernel invocation) -----------
    T = 8
    xs = jax.random.normal(k_in2, (T, FEATURE_DIM), jnp.float32)
    outs, h_last = encoder_rnn_sequence(xs, hidden0, prep)
    outs = jax.block_until_ready(outs)
    h_last = jax.block_until_ready(h_last)

    ref_outs, ref_last = gru_reference_sequence(xs, hidden0, params, bf16_matmul=True)
    if not jnp.allclose(outs, ref_outs, atol=1e-3, rtol=1e-3):
        raise AssertionError("T=8: Pallas GRU sequence mismatch vs bf16-weight reference")
    if not jnp.allclose(h_last.reshape(1, hidden_size), ref_last,
                        atol=1e-3, rtol=1e-3):
        raise AssertionError("T=8: final hidden mismatch vs bf16-weight reference")
    ref_outs_f32, _ = gru_reference_sequence(xs, hidden0, params, bf16_matmul=False)
    if not jnp.allclose(outs, ref_outs_f32, atol=5e-2, rtol=5e-2):
        raise AssertionError("T=8: Pallas GRU drifted too far from f32 reference")

    print("KERNEL_OK")
</pallas_src>

<mosaic_0001>
module attributes {stable_mosaic.version = 11 : i64} {
  func.func @gru_seq_kernel(%arg0: memref<1x64xf32, #tpu.memory_space<vmem>>, %arg1: memref<1x32xf32, #tpu.memory_space<vmem>>, %arg2: memref<64x96xbf16, #tpu.memory_space<vmem>>, %arg3: memref<32x96xbf16, #tpu.memory_space<vmem>>, %arg4: memref<1x96xf32, #tpu.memory_space<vmem>>, %arg5: memref<1x96xf32, #tpu.memory_space<vmem>>, %arg6: memref<1x32xf32, #tpu.memory_space<vmem>>, %arg7: memref<1x96xf32, #tpu.memory_space<vmem>>) attributes {dimension_semantics = [], scalar_prefetch = 0 : i64, scratch_operands = 1 : i64, tpu.core_type = #tpu.core_type<tc>} {
    %c0 = arith.constant 0 : index
    %c0_0 = arith.constant 0 : index
    %0 = vector.load %arg0[%c0, %c0_0] : memref<1x64xf32, #tpu.memory_space<vmem>>, vector<1x64xf32>
    %1 = arith.truncf %0 : vector<1x64xf32> to vector<1x64xbf16>
    %c0_1 = arith.constant 0 : index
    %c0_2 = arith.constant 0 : index
    %2 = vector.load %arg2[%c0_1, %c0_2] : memref<64x96xbf16, #tpu.memory_space<vmem>>, vector<64x96xbf16>
    %cst = arith.constant dense<0.000000e+00> : vector<1x96xf32>
    %3 = tpu.matmul %1, %2, %cst {dimension_numbers = #tpu.dot_dimension_numbers<[1], [0], [0], [1], [0, 0, 1, 1], [], []>} : vector<1x64xbf16>, vector<64x96xbf16>, vector<1x96xf32> -> vector<1x96xf32>
    %c0_3 = arith.constant 0 : index
    %c0_4 = arith.constant 0 : index
    %4 = vector.load %arg4[%c0_3, %c0_4] : memref<1x96xf32, #tpu.memory_space<vmem>>, vector<1x96xf32>
    %5 = arith.addf %3, %4 : vector<1x96xf32>
    %c0_5 = arith.constant 0 : index
    %c0_6 = arith.constant 0 : index
    %6 = vector.load %arg7[%c0_5, %c0_6] : memref<1x96xf32, #tpu.memory_space<vmem>>, vector<1x96xf32>
    tpu.vector_store %arg7[%c0_5, %c0_6], %5 {strides = array<i32>} : memref<1x96xf32, #tpu.memory_space<vmem>>, vector<1x96xf32>,
    %c0_7 = arith.constant 0 : index
    %c0_8 = arith.constant 0 : index
    %7 = vector.load %arg3[%c0_7, %c0_8] : memref<32x96xbf16, #tpu.memory_space<vmem>>, vector<32x96xbf16>
    %c0_9 = arith.constant 0 : index
    %c0_10 = arith.constant 0 : index
    %8 = vector.load %arg5[%c0_9, %c0_10] : memref<1x96xf32, #tpu.memory_space<vmem>>, vector<1x96xf32>
    %c0_11 = arith.constant 0 : index
    %c0_12 = arith.constant 0 : index
    %9 = vector.load %arg1[%c0_11, %c0_12] : memref<1x32xf32, #tpu.memory_space<vmem>>, vector<1x32xf32>
    %c0_i32 = arith.constant 0 : i32
    %10 = arith.truncf %9 : vector<1x32xf32> to vector<1x32xbf16>
    %cst_13 = arith.constant dense<0.000000e+00> : vector<1x96xf32>
    %11 = tpu.matmul %10, %7, %cst_13 {dimension_numbers = #tpu.dot_dimension_numbers<[1], [0], [0], [1], [0, 0, 1, 1], [], []>} : vector<1x32xbf16>, vector<32x96xbf16>, vector<1x96xf32> -> vector<1x96xf32>
    %12 = arith.addf %11, %8 : vector<1x96xf32>
    %13 = arith.index_cast %c0_i32 : i32 to index
    %c0_14 = arith.constant 0 : index
    %14 = vector.load %arg7[%13, %c0_14] : memref<1x96xf32, #tpu.memory_space<vmem>>, vector<1x96xf32>
    %15 = vector.extract_strided_slice %14 {offsets = [0, 0], sizes = [1, 32], strides = [1, 1]} : vector<1x96xf32> to vector<1x32xf32>
    %16 = vector.extract_strided_slice %12 {offsets = [0, 0], sizes = [1, 32], strides = [1, 1]} : vector<1x96xf32> to vector<1x32xf32>
    %17 = arith.addf %15, %16 : vector<1x32xf32>
    %18 = arith.negf %17 : vector<1x32xf32>
    %19 = math.exp %18 : vector<1x32xf32>
    %cst_15 = arith.constant 1.000000e+00 : f32
    %20 = vector.broadcast %cst_15 : f32 to vector<1x32xf32>
    %21 = arith.addf %20, %19 : vector<1x32xf32>
    %22 = arith.divf %20, %21 : vector<1x32xf32>
    %23 = vector.extract_strided_slice %14 {offsets = [0, 32], sizes = [1, 32], strides = [1, 1]} : vector<1x96xf32> to vector<1x32xf32>
    %24 = vector.extract_strided_slice %12 {offsets = [0, 32], sizes = [1, 32], strides = [1, 1]} : vector<1x96xf32> to vector<1x32xf32>
    %25 = arith.addf %23, %24 : vector<1x32xf32>
    %26 = arith.negf %25 : vector<1x32xf32>
    %27 = math.exp %26 : vector<1x32xf32>
    %cst_16 = arith.constant 1.000000e+00 : f32
    %28 = vector.broadcast %cst_16 : f32 to vector<1x32xf32>
    %29 = arith.addf %28, %27 : vector<1x32xf32>
    %30 = arith.divf %28, %29 : vector<1x32xf32>
    %31 = vector.extract_strided_slice %14 {offsets = [0, 64], sizes = [1, 32], strides = [1, 1]} : vector<1x96xf32> to vector<1x32xf32>
    %32 = vector.extract_strided_slice %12 {offsets = [0, 64], sizes = [1, 32], strides = [1, 1]} : vector<1x96xf32> to vector<1x32xf32>
    %33 = arith.mulf %22, %32 : vector<1x32xf32>
    %34 = arith.addf %31, %33 : vector<1x32xf32>
    %35 = math.tanh %34 : vector<1x32xf32>
    %cst_17 = arith.constant 1.000000e+00 : f32
    %36 = vector.broadcast %cst_17 : f32 to vector<1x32xf32>
    %37 = arith.subf %36, %30 : vector<1x32xf32>
    %38 = arith.mulf %37, %35 : vector<1x32xf32>
    %39 = arith.mulf %30, %9 : vector<1x32xf32>
    %40 = arith.addf %38, %39 : vector<1x32xf32>
    %41 = arith.index_cast %c0_i32 : i32 to index
    %c0_18 = arith.constant 0 : index
    %42 = vector.load %arg6[%41, %c0_18] : memref<1x32xf32, #tpu.memory_space<vmem>>, vector<1x32xf32>
    tpu.vector_store %arg6[%41, %c0_18], %40 {strides = array<i32>} : memref<1x32xf32, #tpu.memory_space<vmem>>, vector<1x32xf32>,
    %c1_i32 = arith.constant 1 : i32
    return
  }
}

</mosaic_0001>

<bundles_post_ra>
// kernel: tpu_custom_call.1
= control target key start
LH: loop header
LB: loop body
LE: loop exit
PB: predicated region body
PF: predicated region fallthrough
CT: control target
= control target key end

     0   :  { %11 = vsyncpa [#allocation4], 0  ;;  %s544_s0 = inlined_call_operand.hbm [shape: f32[1,64], index: 0, kind: input, shape index: {}]   ;;  %s545_s1 = inlined_call_operand.vmem [shape: f32[1,32], index: 1, kind: input, shape index: {}]   ;;  %s546_s2 = inlined_call_operand.hbm [shape: bf16[64,96], index: 2, kind: input, shape index: {}]   ;;  %s547_s3 = inlined_call_operand.hbm [shape: bf16[32,96], index: 3, kind: input, shape index: {}]   ;;  %s548_s4 = inlined_call_operand.vmem [shape: f32[1,96], index: 4, kind: input, shape index: {}]   ;;  %s549_s5 = inlined_call_operand.vmem [shape: f32[1,96], index: 5, kind: input, shape index: {}]   ;;  %s550_s6 = inlined_call_operand.hbm [shape: f32[1,32], index: 6, kind: output, shape index: {}]  }
   0x1   :  { %12 = vsyncpa [#allocation7], 0 }
   0x2   :  { %13 = vsyncpa [#allocation5], 0  ;;  %s433_s21 = smov [#allocation6]   ;;  %s339_s25 = scalar_lea.hbm %s546_s2, 512 }
   0x3   :  { %s31_s22 = sshll.u32 %s433_s21, 4  ;;  %p340_p0 = scmp.ne.s32.totalorder %s546_s2, %s339_s25  ;;  %s32_s22 = int_to_ptr.vmem [resolvable:$true] %s31_s22 }
   0x4   :  { %p343_p1 = scmp.lt.u32.totalorder %s339_s25, %s546_s2 }
   0x6   :  { %p345_p2 = pnand %p343_p1, %p340_p0 }
   0x8   :  { %348 = shalt.err (!%p345_p2)
}
   0x9   :  { %s349_s30 = scalar_lea.vmem %s32_s22, 512  ;;  %p354_p4 = scmp.lt.s32.totalorder %s32_s22, %s32_s22 }
   0xa   :  { %p350_p3 = scmp.ne.s32.totalorder %s32_s22, %s349_s30  ;;  %p355_p5 = scmp.lt.s32.totalorder %s349_s30, %s349_s30 }
   0xc   :  { %p356_p6 = por %p355_p5, %p354_p4 }
   0xe   :  { %p357_p7 = pnand %p356_p6, %p350_p3 }
  0x10   :  { %360 = shalt.err (!%p357_p7)
}
  0x11   :  { %s434_s7 = smov 64   ;;  %s435_s8 = smov 4  }
  0x12   :  { %37 = dma.hbm_to_vmem [thread:$0]  %s546_s2, 512, %s32_s22, [#allocation7], %s434_s7, %s434_s7, %s435_s8  }
  0x13   :  { %s436_s11 = smov [#allocation3]   ;;  %s437_s13 = smov [#allocation8]  }
  0x14   :  { %s20_s12 = sshll.u32 %s436_s11, 4  ;;  %s43_s14 = sshll.u32 %s437_s13, 4  ;;  %s21_s12 = int_to_ptr.vmem [resolvable:$true] %s20_s12  ;;  %s44_s14 = int_to_ptr.vmem [resolvable:$true] %s43_s14 }
  0x15   :  { %s361_s17 = scalar_lea.hbm %s544_s0, 16 }
  0x16   :  { %p362_p8 = scmp.ne.s32.totalorder %s544_s0, %s361_s17  ;;  %p365_p9 = scmp.lt.u32.totalorder %s361_s17, %s544_s0 }
  0x18   :  { %p367_p10 = pnand %p365_p9, %p362_p8 }
  0x1a   :  { %370 = shalt.err (!%p367_p10)
}
  0x1b   :  { %s371_s2 = scalar_lea.vmem %s21_s12, 16  ;;  %s375_s22 = scalar_lea.vmem %s21_s12, 32 }
  0x1c   :  { %p372_p11 = scmp.ne.s32.totalorder %s21_s12, %s371_s2  ;;  %p376_p12 = scmp.lt.s32.totalorder %s21_s12, %s21_s12 }
  0x1d   :  { %p377_p13 = scmp.lt.s32.totalorder %s375_s22, %s371_s2 }
  0x1f   :  { %p378_p0 = por %p377_p13, %p376_p12 }
  0x21   :  { %p379_p1 = pnand %p378_p0, %p372_p11 }
  0x23   :  { %382 = shalt.err (!%p379_p1)
}
  0x24   :  { %23 = dma.hbm_to_vmem [thread:$0]  %s544_s0, 16, %s21_s12, [#allocation4]  }
  0x25   :  { %s383_s27 = scalar_lea.hbm %s547_s3, 256 }
  0x26   :  { %p384_p2 = scmp.ne.s32.totalorder %s547_s3, %s383_s27  ;;  %p387_p3 = scmp.lt.u32.totalorder %s383_s27, %s547_s3 }
  0x28   :  { %p389_p4 = pnand %p387_p3, %p384_p2 }
  0x2a   :  { %392 = shalt.err (!%p389_p4)
}
  0x2b   :  { %s393_s10 = scalar_lea.vmem %s44_s14, 256  ;;  %p398_p6 = scmp.lt.s32.totalorder %s44_s14, %s44_s14 }
  0x2c   :  { %p394_p5 = scmp.ne.s32.totalorder %s44_s14, %s393_s10  ;;  %p399_p7 = scmp.lt.s32.totalorder %s393_s10, %s393_s10 }
  0x2e   :  { %p400_p8 = por %p399_p7, %p398_p6 }
  0x30   :  { %p401_p9 = pnand %p400_p8, %p394_p5 }
  0x32   :  { %404 = shalt.err (!%p401_p9)
}
  0x33   :  { %49 = dma.hbm_to_vmem [thread:$0]  %s547_s3, 256, %s44_s14, [#allocation7], %s434_s7, %s434_s7, %s435_s8  }
  0x34   :  { %427 = dma.done.wait [#allocation4], 16  }
  0x35   :  { %428 = vsyncadd [#allocation4], 4294967280 }
  0x36   :  { %429 = dma.done.wait [#allocation7], 768  }
  0x37   :  { %430 = vsyncadd [#allocation7], 4294966528  ;;  %v438_v0 = vmov 0.0   ;;  %vm439_vm0 = vmmov 0   ;;  %v327_v1 = vld [vmem:[#allocation6] sm:$0xff]   ;;  %v329_v3 = vld [vmem:[#allocation6 + $0x8] sm:$0xff]   ;;  %v220_v13 = vlaneseq }
  0x38   :  { %296 = vmatprep.subr.bf16.mxu0 %v438_v0  ;;  %308 = vmatprep.subr.bf16.mxu1 %v438_v0  ;;  %v328_v2 = vld [vmem:[#allocation8] sm:$0xff]   ;;  %v330_v4 = vld [vmem:[#allocation8 + $0x8] sm:$0xff]   ;;  %v150_v5 = vld [vmem:[%s545_s1] sm:$0x1]  ;;  %vm164_vm1 = vcmask 261120   ;;  %vm99_vm2 = vcmask 523264  }
  0x39   :  { %312 = vmatprep.mubr.msk.bf16.mxu1 %vm439_vm0, %v438_v0  ;;  %304 = vmatprep.mubr.msk.bf16.mxu0 %vm439_vm0, %v438_v0  ;;  %v151_v6 = vpack.c.bf16 %v150_v5, %v150_v5  ;;  %v331_v7 = vld [vmem:[#allocation6 + $0x10] sm:$0xff]   ;;  %v332_v8 = vld [vmem:[#allocation6 + $0x18] sm:$0xff]   ;;  %v440_v11 = vmov 1966171168   ;;  %v221_v15 = vshrl.u32 %v220_v13, 7  ;;  %vm143_vm3 = vcmask 778240  }
  0x3a   :  { %297 = vmatpush3.bf16.msra.mxu0 %v327_v1  ;;  %309 = vmatpush3.bf16.msra.mxu1 %v328_v2  ;;  %v64_v9 = vld [vmem:[#allocation3] sm:$0x1]  ;;  %v218_v12 = vunpack.c.l.s4 %v440_v11  ;;  %v149_v16 = vld [vmem:[%s549_s5] sm:$0x1]  ;;  %s442_s5 = smov 32   ;;  %s443_s15 = smov [#allocation9]  }
  0x3b   :  { %298 = vmatprep.subr.bf16.mxu0 %v438_v0  ;;  %310 = vmatprep.subr.bf16.mxu1 %v438_v0  ;;  %v65_v10 = vpack.c.bf16 %v64_v9, %v64_v9  ;;  %v74_v25 = vld [vmem:[%s548_s4] sm:$0x1]  ;;  %s441_s4 = smov 96   ;;  %v256_v47 = vsub.s32 0, %v221_v15  ;;  %s269_s16 = sshll.u32 %s443_s15, 4  ;;  %vm261_vm4 = vcmask 253952   ;;  %s270_s16 = int_to_ptr.vmem [resolvable:$true] %s269_s16 }
  0x3c   :  { %v219_v14 = vunpack.c.0.s8 %v218_v12  ;;  %s409_s17 = scalar_lea.vmem %s270_s16, 32  ;;  %p410_p11 = scmp.lt.s32.totalorder %s270_s16, %s270_s16 }
  0x3e   :  { %299 = vmatpush3.bf16.msra.mxu0 %v329_v3  ;;  %311 = vmatpush3.bf16.msra.mxu1 %v330_v4  ;;  %v222_v17 = vsub.s32 %v219_v14, %v221_v15 }
  0x3f   :  { %300 = vmatprep.subr.bf16.mxu0 %v438_v0 }
  0x41   :  { %313 = vmatmul.mubr.msk.bf16.vlgmr.msra.gmra.mrb[0].mxu1 %vm164_vm1, %v151_v6 }
  0x42   :  { %301 = vmatpush3.bf16.msra.mxu0 %v331_v7 }
  0x43   :  { %302 = vmatprep.subr.bf16.mxu0 %v438_v0 }
  0x46   :  { %303 = vmatpush3.bf16.msra.mxu0 %v332_v8 }
  0x49   :  { %305 = vmatmul.mubr.msk.bf16.vlgmr.msra.gmra.mrb[0].mxu0 %vm99_vm2, %v65_v10 }
 0x114   :  { %v202_v18 = vpop.f32.mrb[0].mxu1 }
 0x115   :  { %v203_v19 = vadd.f32 %v202_v18, %v149_v16  ;;  %v314_v20 = vpop.f32.mrb[1].mxu1 }
 0x116   :  { %v205_v21 = vpop.f32.mrb[2].mxu1 }
 0x117   :  { %v315_v22 = vpop.f32.mrb[3].mxu1  ;;  %v223_v23 = vrot.slane %v203_v19, %v222_v17 }
 0x119   :  { %v230_v24 = vrot.slane %v223_v23, %v222_v17 }
 0x11b   :  { %231 = vrot.lane.b32.xlu0 %v230_v24, %s434_s7 }
 0x11c   :  { %v137_v26 = vpop.f32.mrb[0].mxu0 }
 0x11d   :  { %v138_v27 = vadd.f32 %v137_v26, %v74_v25  ;;  %v306_v28 = vpop.f32.mrb[1].mxu0 }
 0x11e   :  { %v140_v29 = vpop.f32.mrb[2].mxu0 }
 0x11f   :  { %144 = vst.msk [vmem:[#allocation2] sm:$0x1] %vm143_vm3, %v138_v27  ;;  %v307_v30 = vpop.f32.mrb[3].mxu0 }
 0x126   :  { %v208_v31 = vld [vmem:[#allocation2] sm:$0x1] }
 0x127   :  { %v209_v32 = vadd.f32 %v208_v31, %v203_v19 }
 0x129   :  { %v287_v33 = vmul.f32 -1.442695, %v209_v32 }
 0x12b   :  { %333 = vpow2.f32 %v287_v33 }
 0x135   :  { %v334_v34 = vpop.eup %333 }
 0x136   :  { %v213_v35 = vadd.f32 1.0, %v334_v34 }
 0x138   :  { %335 = vrcp.f32 %v213_v35 }
 0x142   :  { %v336_v36 = vpop.eup %335 }
 0x143   :  { %v241_v43 = vsub.f32 1.0, %v336_v36 }
 0x18d   :  { %v232_v37 = vpop.permute.xlu0 %231 }
 0x18e   :  { %v234_v38 = vmul.f32 %v336_v36, %v232_v37 }
 0x190   :  { %236 = vrot.lane.b32.xlu0 %v234_v38, %s434_s7  ;;  %s405_s7 = scalar_lea.vmem %s270_s16, 16 }
 0x191   :  { %p406_p10 = scmp.ne.s32.totalorder %s270_s16, %s405_s7  ;;  %p411_p12 = scmp.lt.s32.totalorder %s409_s17, %s405_s7 }
 0x193   :  { %p412_p13 = por %p411_p12, %p410_p11 }
 0x195   :  { %p413_p0 = pnand %p412_p13, %p406_p10 }
 0x202   :  { %v237_v39 = vpop.permute.xlu0 %236 }
 0x203   :  { %v239_v40 = vadd.f32 %v237_v39, %v208_v31 }
 0x205   :  { %337 = vtanh.f32 %v239_v40 }
 0x20f   :  { %v338_v41 = vpop.eup %337 }
 0x210   :  { %243 = vrot.lane.b32.xlu1 %v338_v41, %s441_s4 }
 0x214   :  { %248 = vrot.lane.b32.xlu1 %v150_v5, %s442_s5 }
 0x282   :  { %v244_v42 = vpop.permute.xlu1 %243 }
 0x283   :  { %v246_v45 = vmul.f32 %v244_v42, %v241_v43 }
 0x286   :  { %v249_v44 = vpop.permute.xlu1 %248 }
 0x287   :  { %v251_v46 = vmul.f32 %v336_v36, %v249_v44 }
 0x289   :  { %v252_v48 = vadd.f32 %v251_v46, %v246_v45 }
 0x28b   :  { %v257_v49 = vrot.slane %v252_v48, %v256_v47 }
 0x28d   :  { %258 = vrot.lane.b32.xlu0 %v257_v49, %s441_s4 }
 0x2ff   :  { %v259_v50 = vpop.permute.xlu0 %258 }
 0x300   :  { %262 = vst.msk [vmem:[#allocation9] sm:$0x1] %vm261_vm4, %v259_v50 }
 0x301   :  { %416 = shalt.err (!%p413_p0)
}
 0x302   :  { %s417_s20 = scalar_lea.hbm %s550_s6, 16 }
 0x303   :  { %p418_p1 = scmp.ne.s32.totalorder %s550_s6, %s417_s20  ;;  %p421_p2 = scmp.lt.u32.totalorder %s417_s20, %s550_s6 }
 0x305   :  { %p423_p3 = pnand %p421_p2, %p418_p1 }
 0x307   :  { %426 = shalt.err (!%p423_p3)
}
 0x308   :  { %272 = dma.vmem_to_hbm [thread:$0]  %s270_s16, 16, %s550_s6, [#allocation5]  }
 0x309   :  { %431 = dma.done.wait [#allocation5], 16  }
 0x30a   :  { %432 = vsyncadd [#allocation5], 4294967280 }
 0x30b   :  { %276 = vsyncpa [#allocation4], 1 }
 0x30c   :  { %277 = vsyncpa [#allocation7], 1 }
 0x30d   :  { %278 = vsyncpa [#allocation5], 1 }

</bundles_post_ra>
